<compile_context>
chip_gen: v7x
topology: tpu7x:2x2x1
jax: 0.10.0
libtpu: 0.0.40
codegen_flags: <defaults>
</compile_context>

<pallas_src>
import functools

import jax
import jax.numpy as jnp
from jax.experimental import pallas as pl
from jax.experimental.pallas import tpu as pltpu

# Margins from the PyTorch module's __init__ (no learnable parameters).
MARGIN_DOC1_2 = 0.2
MARGIN_DOC2_3 = 0.1
MARGIN_DOC3_REMAINING = 0.15
MARGIN_REMAINING_NEG = 0.3


def _make_kernel(true_b: int, tb: int, n_neg: int, d: int):
    """Kernel body for one (tb, D) batch tile; emits a per-tile partial sum."""

    def kernel(q_ref, d1_ref, d2_ref, d3_ref, rem_ref, neg_ref, out_ref):
        i = pl.program_id(0)
        q = q_ref[...]                       # (tb, D), input dtype
        rem = rem_ref[...]

        # Hoisted (D, 1) ones column: lane-axis reductions become MXU matmuls
        # (the MXU is otherwise idle here; keeps the XLU off the critical slot).
        ones_col = jnp.ones((d, 1), dtype=q.dtype)

        def rowdot(x):                       # (rows, D) -> (rows, 1) f32 on MXU
            return jnp.dot(x, ones_col, preferred_element_type=jnp.float32)

        relu = lambda x: jnp.maximum(x, 0.0)

        # Triplet margin terms: similarity differences computed in the
        # D-domain, each reduced with a single ones-column matmul.
        s12 = rowdot(q * (d1_ref[...] - d2_ref[...]))   # doc1_sim - doc2_sim
        s23 = rowdot(q * (d2_ref[...] - d3_ref[...]))   # doc2_sim - doc3_sim
        s3r = rowdot(q * (d3_ref[...] - rem))           # doc3_sim - rem_sim

        row_loss = (relu(MARGIN_DOC1_2 - s12)
                    + relu(MARGIN_DOC2_3 - s23)
                    + relu(MARGIN_DOC3_REMAINING - s3r))            # (tb, 1)

        # Mask rows beyond the true batch (ragged last tile is read unpadded;
        # a select -- not a multiply -- so garbage/NaN rows cannot propagate).
        rows = i * tb + jax.lax.broadcasted_iota(jnp.int32, (tb, 1), 0)
        row_loss = jnp.where(rows < true_b, row_loss, 0.0)

        # Negatives: one broadcasted multiply over the whole (tb, N, D) block
        # (no per-n sublane slicing), flattened to (tb*N, D) -- layout-free
        # when N == 8 -- and reduced with one ones-column matmul.  Computing
        # q * (rem - neg) yields (remaining_sim - neg_sim) directly, so no
        # per-row similarity repeat is needed.
        p = q[:, None, :] * (rem[:, None, :] - neg_ref[...])        # (tb, N, D)
        diff_flat = rowdot(p.reshape(tb * n_neg, d))                # (tb*N, 1)
        neg_loss = relu(MARGIN_REMAINING_NEG - diff_flat)

        # Flat-row mask without an integer divide: global flat index < B*N
        # iff the owning batch row < B.
        flat = (i * (tb * n_neg)
                + jax.lax.broadcasted_iota(jnp.int32, (tb * n_neg, 1), 0))
        neg_loss = jnp.where(flat < true_b * n_neg, neg_loss, 0.0)

        tile_sum = (jnp.sum(row_loss, axis=0, keepdims=True)
                    + (1.0 / n_neg) * jnp.sum(neg_loss, axis=0, keepdims=True))

        # Per-tile partial written as a full unmasked (8, 128) block so the
        # batch grid axis can be "parallel" (both TensorCores on v7x).
        out_ref[...] = jnp.broadcast_to(tile_sum, out_ref.shape)

    return kernel


def _vmem_capacity_bytes() -> int:
    try:
        return int(pltpu.get_tpu_info().vmem_capacity_bytes)
    except Exception:
        return 128 << 20  # v5e/v6e default if the query is unavailable


def _choose_batch_tile(B, D, N, itemsize, vmem_budget, tb_cap, sublane):
    # Double-buffered input bytes per batch row + f32 working set for the
    # broadcast/product (N, D) temporaries.
    per_row = 2 * (5 + N) * D * itemsize + (2 * N + 4) * D * 4
    tb = int(min(vmem_budget // max(per_row, 1), tb_cap, B))
    if tb >= B:
        return B                                   # single full-extent block
    return max(sublane, (tb // sublane) * sublane)


@functools.partial(jax.jit, static_argnames=("tb",))
def pairwise_ranking_loss(query_emb, doc1_emb, doc2_emb, doc3_emb,
                          remaining_emb, neg_embs, *, tb=None):
    """Scalar mean pairwise ranking loss (matches the PyTorch forward)."""
    B, D = query_emb.shape
    N = neg_embs.shape[1]
    itemsize = jnp.dtype(query_emb.dtype).itemsize
    sublane = 16 if itemsize == 2 else 8           # bf16 packs 2 rows/sublane

    vmem_cap = _vmem_capacity_bytes()
    small_vmem = vmem_cap <= (64 << 20)            # e.g. v7x: 64 MiB per TC
    tb_cap = 512 if small_vmem else 1024
    vmem_budget = (24 << 20) if small_vmem else (56 << 20)

    if tb is None:
        tb = _choose_batch_tile(B, D, N, itemsize, vmem_budget, tb_cap, sublane)
    tb = int(min(tb, B))
    if tb < B:
        tb = max(sublane, (tb // sublane) * sublane)
    n_tiles = pl.cdiv(B, tb)

    # No jnp.pad: the ragged last tile is masked inside the kernel (avoids a
    # full extra HBM pass over every input when B % tb != 0).
    doc_spec = lambda: pl.BlockSpec((tb, D), lambda i: (i, 0))
    in_specs = [doc_spec() for _ in range(5)] + [
        pl.BlockSpec((tb, N, D), lambda i: (i, 0, 0))]
    # One full (8, 128) partial-sum block per tile: distinct, lane-dense,
    # unmasked stores -> the batch grid axis can be "parallel".
    out_spec = pl.BlockSpec((8, 128), lambda i: (i, 0))

    partials = pl.pallas_call(
        _make_kernel(B, tb, N, D),
        out_shape=jax.ShapeDtypeStruct((n_tiles * 8, 128), jnp.float32),
        grid=(n_tiles,),
        in_specs=in_specs,
        out_specs=out_spec,
        compiler_params=pltpu.CompilerParams(
            dimension_semantics=("parallel",),
            vmem_limit_bytes=(28 << 20) if small_vmem else (64 << 20),
        ),
    )(query_emb, doc1_emb, doc2_emb, doc3_emb, remaining_emb, neg_embs)

    # Tiny wrapper-side reduction over the per-tile partials, then the mean.
    return jnp.sum(partials.reshape(n_tiles, 8, 128)[:, 0, 0]) / B


def _reference_loss(query_emb, doc1_emb, doc2_emb, doc3_emb, remaining_emb,
                    neg_embs):
    """Pure-JAX reference mirroring the PyTorch forward."""
    doc1_sim = jnp.sum(query_emb * doc1_emb, axis=1)
    doc2_sim = jnp.sum(query_emb * doc2_emb, axis=1)
    doc3_sim = jnp.sum(query_emb * doc3_emb, axis=1)
    remaining_sim = jnp.sum(query_emb * remaining_emb, axis=1)
    neg_sims = jnp.sum(query_emb[:, None, :] * neg_embs, axis=2)
    relu = lambda x: jnp.maximum(x, 0.0)
    loss = jnp.zeros_like(doc1_sim)
    loss += relu(MARGIN_DOC1_2 - (doc1_sim - doc2_sim))
    loss += relu(MARGIN_DOC2_3 - (doc2_sim - doc3_sim))
    loss += relu(MARGIN_DOC3_REMAINING - (doc3_sim - remaining_sim))
    loss += jnp.mean(
        relu(MARGIN_REMAINING_NEG - (remaining_sim[:, None] - neg_sims)),
        axis=1,
    )
    return jnp.mean(loss)


if __name__ == "__main__":
    B, D, N = 20, 128, 8  # batch, embedding dim, num negatives

    key = jax.random.PRNGKey(0)
    k_q, k1, k2, k3, k_r, k_n = jax.random.split(key, 6)
    query_emb = jax.random.normal(k_q, (B, D), dtype=jnp.float32)
    doc1_emb = jax.random.normal(k1, (B, D), dtype=jnp.float32)
    doc2_emb = jax.random.normal(k2, (B, D), dtype=jnp.float32)
    doc3_emb = jax.random.normal(k3, (B, D), dtype=jnp.float32)
    remaining_emb = jax.random.normal(k_r, (B, D), dtype=jnp.float32)
    neg_embs = jax.random.normal(k_n, (B, N, D), dtype=jnp.float32)

    ref = _reference_loss(query_emb, doc1_emb, doc2_emb, doc3_emb,
                          remaining_emb, neg_embs)

    # 1) Forced small tile: 3 tiles of 8 rows with a ragged last tile —
    #    exercises the unpadded path, in-kernel masking and per-tile partials.
    loss_tiled = pairwise_ranking_loss(query_emb, doc1_emb, doc2_emb, doc3_emb,
                                       remaining_emb, neg_embs, tb=8)
    loss_tiled = jax.block_until_ready(loss_tiled)
    assert jnp.allclose(loss_tiled, ref, atol=1e-4, rtol=1e-4), (loss_tiled, ref)

    # 2) Auto tile selection (single full-batch block at these small shapes).
    loss_auto = pairwise_ranking_loss(query_emb, doc1_emb, doc2_emb, doc3_emb,
                                      remaining_emb, neg_embs)
    loss_auto = jax.block_until_ready(loss_auto)
    assert jnp.allclose(loss_auto, ref, atol=1e-4, rtol=1e-4), (loss_auto, ref)

    print("KERNEL_OK")
</pallas_src>

<mosaic_0001>
module attributes {stable_mosaic.version = 11 : i64} {
  func.func @kernel(%arg0: i32, %arg1: memref<8x128xf32, #tpu.memory_space<vmem>>, %arg2: memref<8x128xf32, #tpu.memory_space<vmem>>, %arg3: memref<8x128xf32, #tpu.memory_space<vmem>>, %arg4: memref<8x128xf32, #tpu.memory_space<vmem>>, %arg5: memref<8x128xf32, #tpu.memory_space<vmem>>, %arg6: memref<8x8x128xf32, #tpu.memory_space<vmem>>, %arg7: memref<8x128xf32, #tpu.memory_space<vmem>>) attributes {dimension_semantics = [#tpu.dimension_semantics<parallel>], iteration_bounds = array<i64: 3>, scalar_prefetch = 0 : i64, scratch_operands = 0 : i64, tpu.core_type = #tpu.core_type<tc>, window_params = [{transform_indices = @transform_0, window_bounds = array<i64: 8, 128>}, {transform_indices = @transform_1, window_bounds = array<i64: 8, 128>}, {transform_indices = @transform_2, window_bounds = array<i64: 8, 128>}, {transform_indices = @transform_3, window_bounds = array<i64: 8, 128>}, {transform_indices = @transform_4, window_bounds = array<i64: 8, 128>}, {transform_indices = @transform_5, window_bounds = array<i64: 8, 8, 128>}, {transform_indices = @transform_6, window_bounds = array<i64: 8, 128>}]} {
    %c0 = arith.constant 0 : index
    %c0_0 = arith.constant 0 : index
    %0 = vector.load %arg1[%c0, %c0_0] : memref<8x128xf32, #tpu.memory_space<vmem>>, vector<8x128xf32>
    %c0_1 = arith.constant 0 : index
    %c0_2 = arith.constant 0 : index
    %1 = vector.load %arg5[%c0_1, %c0_2] : memref<8x128xf32, #tpu.memory_space<vmem>>, vector<8x128xf32>
    %cst = arith.constant 1.000000e+00 : f32
    %2 = vector.broadcast %cst : f32 to vector<128x1xf32>
    %c0_3 = arith.constant 0 : index
    %c0_4 = arith.constant 0 : index
    %3 = vector.load %arg2[%c0_3, %c0_4] : memref<8x128xf32, #tpu.memory_space<vmem>>, vector<8x128xf32>
    %c0_5 = arith.constant 0 : index
    %c0_6 = arith.constant 0 : index
    %4 = vector.load %arg3[%c0_5, %c0_6] : memref<8x128xf32, #tpu.memory_space<vmem>>, vector<8x128xf32>
    %5 = arith.subf %3, %4 : vector<8x128xf32>
    %6 = arith.mulf %0, %5 : vector<8x128xf32>
    %cst_7 = arith.constant dense<0.000000e+00> : vector<8x1xf32>
    %7 = tpu.matmul %6, %2, %cst_7 {dimension_numbers = #tpu.dot_dimension_numbers<[1], [0], [0], [1], [0, 0, 1, 1], [], []>} : vector<8x128xf32>, vector<128x1xf32>, vector<8x1xf32> -> vector<8x1xf32>
    %c0_8 = arith.constant 0 : index
    %c0_9 = arith.constant 0 : index
    %8 = vector.load %arg3[%c0_8, %c0_9] : memref<8x128xf32, #tpu.memory_space<vmem>>, vector<8x128xf32>
    %c0_10 = arith.constant 0 : index
    %c0_11 = arith.constant 0 : index
    %9 = vector.load %arg4[%c0_10, %c0_11] : memref<8x128xf32, #tpu.memory_space<vmem>>, vector<8x128xf32>
    %10 = arith.subf %8, %9 : vector<8x128xf32>
    %11 = arith.mulf %0, %10 : vector<8x128xf32>
    %cst_12 = arith.constant dense<0.000000e+00> : vector<8x1xf32>
    %12 = tpu.matmul %11, %2, %cst_12 {dimension_numbers = #tpu.dot_dimension_numbers<[1], [0], [0], [1], [0, 0, 1, 1], [], []>} : vector<8x128xf32>, vector<128x1xf32>, vector<8x1xf32> -> vector<8x1xf32>
    %c0_13 = arith.constant 0 : index
    %c0_14 = arith.constant 0 : index
    %13 = vector.load %arg4[%c0_13, %c0_14] : memref<8x128xf32, #tpu.memory_space<vmem>>, vector<8x128xf32>
    %14 = arith.subf %13, %1 : vector<8x128xf32>
    %15 = arith.mulf %0, %14 : vector<8x128xf32>
    %cst_15 = arith.constant dense<0.000000e+00> : vector<8x1xf32>
    %16 = tpu.matmul %15, %2, %cst_15 {dimension_numbers = #tpu.dot_dimension_numbers<[1], [0], [0], [1], [0, 0, 1, 1], [], []>} : vector<8x128xf32>, vector<128x1xf32>, vector<8x1xf32> -> vector<8x1xf32>
    %cst_16 = arith.constant 2.000000e-01 : f32
    %17 = vector.broadcast %cst_16 : f32 to vector<8x1xf32>
    %18 = arith.subf %17, %7 : vector<8x1xf32>
    %cst_17 = arith.constant 0.000000e+00 : f32
    %19 = vector.broadcast %cst_17 : f32 to vector<8x1xf32>
    %20 = arith.maximumf %18, %19 : vector<8x1xf32>
    %cst_18 = arith.constant 1.000000e-01 : f32
    %21 = vector.broadcast %cst_18 : f32 to vector<8x1xf32>
    %22 = arith.subf %21, %12 : vector<8x1xf32>
    %cst_19 = arith.constant 0.000000e+00 : f32
    %23 = vector.broadcast %cst_19 : f32 to vector<8x1xf32>
    %24 = arith.maximumf %22, %23 : vector<8x1xf32>
    %25 = arith.addf %20, %24 : vector<8x1xf32>
    %cst_20 = arith.constant 1.500000e-01 : f32
    %26 = vector.broadcast %cst_20 : f32 to vector<8x1xf32>
    %27 = arith.subf %26, %16 : vector<8x1xf32>
    %cst_21 = arith.constant 0.000000e+00 : f32
    %28 = vector.broadcast %cst_21 : f32 to vector<8x1xf32>
    %29 = arith.maximumf %27, %28 : vector<8x1xf32>
    %30 = arith.addf %25, %29 : vector<8x1xf32>
    %c8_i32 = arith.constant 8 : i32
    %31 = arith.muli %arg0, %c8_i32 : i32
    %32 = tpu.iota {dimensions = array<i32: 0>} : vector<8x1xi32>
    %33 = vector.broadcast %31 : i32 to vector<8x1xi32>
    %34 = arith.addi %33, %32 : vector<8x1xi32>
    %c20_i32 = arith.constant 20 : i32
    %35 = vector.broadcast %c20_i32 : i32 to vector<8x1xi32>
    %36 = arith.cmpi slt, %34, %35 : vector<8x1xi32>
    %cst_22 = arith.constant 0.000000e+00 : f32
    %37 = vector.broadcast %cst_22 : f32 to vector<8x1xf32>
    %38 = arith.select %36, %30, %37 : vector<8x1xi1>, vector<8x1xf32>
    %39 = vector.shape_cast %0 : vector<8x128xf32> to vector<8x1x128xf32>
    %40 = vector.shape_cast %1 : vector<8x128xf32> to vector<8x1x128xf32>
    %c0_23 = arith.constant 0 : index
    %c0_24 = arith.constant 0 : index
    %c0_25 = arith.constant 0 : index
    %41 = vector.load %arg6[%c0_23, %c0_24, %c0_25] : memref<8x8x128xf32, #tpu.memory_space<vmem>>, vector<8x8x128xf32>
    %42 = vector.broadcast %40 : vector<8x1x128xf32> to vector<8x8x128xf32>
    %43 = arith.subf %42, %41 : vector<8x8x128xf32>
    %44 = vector.broadcast %39 : vector<8x1x128xf32> to vector<8x8x128xf32>
    %45 = arith.mulf %44, %43 : vector<8x8x128xf32>
    %46 = vector.shape_cast %45 : vector<8x8x128xf32> to vector<64x128xf32>
    %cst_26 = arith.constant dense<0.000000e+00> : vector<64x1xf32>
    %47 = tpu.matmul %46, %2, %cst_26 {dimension_numbers = #tpu.dot_dimension_numbers<[1], [0], [0], [1], [0, 0, 1, 1], [], []>} : vector<64x128xf32>, vector<128x1xf32>, vector<64x1xf32> -> vector<64x1xf32>
    %cst_27 = arith.constant 3.000000e-01 : f32
    %48 = vector.broadcast %cst_27 : f32 to vector<64x1xf32>
    %49 = arith.subf %48, %47 : vector<64x1xf32>
    %cst_28 = arith.constant 0.000000e+00 : f32
    %50 = vector.broadcast %cst_28 : f32 to vector<64x1xf32>
    %51 = arith.maximumf %49, %50 : vector<64x1xf32>
    %c64_i32 = arith.constant 64 : i32
    %52 = arith.muli %arg0, %c64_i32 : i32
    %53 = tpu.iota {dimensions = array<i32: 0>} : vector<64x1xi32>
    %54 = vector.broadcast %52 : i32 to vector<64x1xi32>
    %55 = arith.addi %54, %53 : vector<64x1xi32>
    %c160_i32 = arith.constant 160 : i32
    %56 = vector.broadcast %c160_i32 : i32 to vector<64x1xi32>
    %57 = arith.cmpi slt, %55, %56 : vector<64x1xi32>
    %cst_29 = arith.constant 0.000000e+00 : f32
    %58 = vector.broadcast %cst_29 : f32 to vector<64x1xf32>
    %59 = arith.select %57, %51, %58 : vector<64x1xi1>, vector<64x1xf32>
    %cst_30 = arith.constant dense<0.000000e+00> : vector<1xf32>
    %60 = vector.multi_reduction <add>, %38, %cst_30 [0] : vector<8x1xf32> to vector<1xf32>
    %61 = vector.shape_cast %60 : vector<1xf32> to vector<1x1xf32>
    %cst_31 = arith.constant dense<0.000000e+00> : vector<1xf32>
    %62 = vector.multi_reduction <add>, %59, %cst_31 [0] : vector<64x1xf32> to vector<1xf32>
    %63 = vector.shape_cast %62 : vector<1xf32> to vector<1x1xf32>
    %cst_32 = arith.constant 1.250000e-01 : f32
    %64 = vector.broadcast %cst_32 : f32 to vector<1x1xf32>
    %65 = arith.mulf %64, %63 : vector<1x1xf32>
    %66 = arith.addf %61, %65 : vector<1x1xf32>
    %67 = vector.shape_cast %66 : vector<1x1xf32> to vector<1x1xf32>
    %68 = vector.broadcast %67 : vector<1x1xf32> to vector<8x128xf32>
    %c0_33 = arith.constant 0 : index
    %c0_34 = arith.constant 0 : index
    %69 = vector.load %arg7[%c0_33, %c0_34] : memref<8x128xf32, #tpu.memory_space<vmem>>, vector<8x128xf32>
    tpu.vector_store %arg7[%c0_33, %c0_34], %68 {strides = array<i32>} : memref<8x128xf32, #tpu.memory_space<vmem>>, vector<8x128xf32>,
    return
  }
  func.func @transform_0(%arg0: i32) -> (i32, i32) {
    %c0_i32 = arith.constant 0 : i32
    %c0_i32_0 = arith.constant 0 : i32
    return %arg0, %c0_i32 : i32, i32
  }
  func.func @transform_1(%arg0: i32) -> (i32, i32) {
    %c0_i32 = arith.constant 0 : i32
    %c0_i32_0 = arith.constant 0 : i32
    return %arg0, %c0_i32 : i32, i32
  }
  func.func @transform_2(%arg0: i32) -> (i32, i32) {
    %c0_i32 = arith.constant 0 : i32
    %c0_i32_0 = arith.constant 0 : i32
    return %arg0, %c0_i32 : i32, i32
  }
  func.func @transform_3(%arg0: i32) -> (i32, i32) {
    %c0_i32 = arith.constant 0 : i32
    %c0_i32_0 = arith.constant 0 : i32
    return %arg0, %c0_i32 : i32, i32
  }
  func.func @transform_4(%arg0: i32) -> (i32, i32) {
    %c0_i32 = arith.constant 0 : i32
    %c0_i32_0 = arith.constant 0 : i32
    return %arg0, %c0_i32 : i32, i32
  }
  func.func @transform_5(%arg0: i32) -> (i32, i32, i32) {
    %c0_i32 = arith.constant 0 : i32
    %c0_i32_0 = arith.constant 0 : i32
    %c0_i32_1 = arith.constant 0 : i32
    return %arg0, %c0_i32, %c0_i32_0 : i32, i32, i32
  }
  func.func @transform_6(%arg0: i32) -> (i32, i32) {
    %c0_i32 = arith.constant 0 : i32
    %c0_i32_0 = arith.constant 0 : i32
    return %arg0, %c0_i32 : i32, i32
  }
}

</mosaic_0001>

<bundles_post_ra>
// kernel: pairwise_ranking_loss.1
= control target key start
LH: loop header
LB: loop body
LE: loop exit
PB: predicated region body
PF: predicated region fallthrough
CT: control target
= control target key end

     0   :  { %s2467_s0 = inlined_call_operand.hbm [shape: f32[20,128], index: 0, kind: input, shape index: {}]   ;;  %s2468_s1 = inlined_call_operand.hbm [shape: f32[20,128], index: 1, kind: input, shape index: {}]   ;;  %s2469_s2 = inlined_call_operand.hbm [shape: f32[20,128], index: 2, kind: input, shape index: {}]   ;;  %s2470_s3 = inlined_call_operand.hbm [shape: f32[20,128], index: 3, kind: input, shape index: {}]   ;;  %s2471_s4 = inlined_call_operand.hbm [shape: f32[20,128], index: 4, kind: input, shape index: {}]   ;;  %s2472_s5 = inlined_call_operand.hbm [shape: f32[20,8,128], index: 5, kind: input, shape index: {}]   ;;  %s2473_s6 = inlined_call_operand.hbm [shape: f32[24,128], index: 6, kind: output, shape index: {}]  }
   0x1   :  { %2478 = sst [smem:[#allocation21_spill]] %s2468_s1 }
   0x2   :  { %2479 = sst [smem:[#allocation22_spill]] %s2470_s3 }
   0x3   :  { %11 = vsyncpa [#allocation3], 0 }
   0x4   :  { %13 = vsyncpa [#allocation3 + $0x1], 0 }
   0x5   :  { %14 = vsyncpa [#allocation6], 0 }
   0x6   :  { %16 = vsyncpa [#allocation6 + $0x1], 0 }
   0x7   :  { %17 = vsyncpa [#allocation9], 0 }
   0x8   :  { %19 = vsyncpa [#allocation9 + $0x1], 0 }
   0x9   :  { %20 = vsyncpa [#allocation12], 0 }
   0xa   :  { %22 = vsyncpa [#allocation12 + $0x1], 0 }
   0xb   :  { %23 = vsyncpa [#allocation4], 0 }
   0xc   :  { %25 = vsyncpa [#allocation4 + $0x1], 0  ;;  %s1966_s21 = smov 0   ;;  %s1968_s22 = smov 0  }
   0xd   :  { %s1970_s23 = smov 0   ;;  %s1972_s24 = smov 0  }
   0xe LB: > { %2480 = sst [smem:[#allocation19_spill]] %s1910_s23  ;;  %s1987_s25 = sadd.s32 4294967295, %s1914_s24   ;;  %s1914_s24 = sphi %s1972_s24, %s2496_s24   ;;  %s1910_s23 = sphi %s1970_s23, %s2493_s23   ;;  %s1906_s22 = sphi %s1968_s22, %s2495_s22   ;;  %s1902_s21 = sphi %s1966_s21, %s2494_s21  }
   0xf   : > { %s1284_s26 = sadd.s32 4294967294, %s1914_s24   ;;  %s1991_s27 = sadd.s32 1, %s1914_s24  }
  0x10   : > { %s38_s28 = sadd.s32 1, %s1910_s23  ;;  %s35_s29 = ssub.s32 %s1914_s24, %s1991_s27 }
  0x11   : > { %p45_p0 = scmp.ne.s32.totalorder %s1910_s23, %s1906_s22  ;;  %p36_p1 = scmp.eq.s32.totalorder %s35_s29, 0 }
  0x12   : > { %p46_p2 = scmp.eq.s32.totalorder %s1914_s24, 0  ;;  %p51_p3 = scmp.ne.s32.totalorder %s1906_s22, %s1902_s21 }
  0x13   : > { %p52_p4 = scmp.eq.s32.totalorder %s1987_s25, 0  ;;  %p205_p7 = scmp.eq.s32.totalorder %s1987_s25, 2 }
  0x14   : > { %s2003_s30 = scalar_select %p36_p1, %s1910_s23, %s38_s28  }
  0x15   : > { %p2005_p5 = por %p46_p2, %p45_p0  ;;  %p2009_p6 = por %p52_p4, %p51_p3 }
  0x16   : > { %2481 = sst [smem:[#allocation20_spill]] %s2003_s30  ;;  %p211_p8 = scmp.eq.s32.totalorder %s1284_s26, 2 }
  0x17   : > { %s2483_s8 = scalar_select %p2009_p6, 1, 0 }
  0x18   : > { %p2014_p9 = por %p205_p7, %p45_p0  ;;  %p2018_p10 = por %p211_p8, %p51_p3 }
  0x19   : > { %p1286_p11 = scmp.ge.s32.totalorder %s1914_s24, 3 }
  0x1a   : > { %s2484_s9 = scalar_select %p2014_p9, 1, 0 }
  0x1b   : > { %s2485_s10 = scalar_select %p2018_p10, 1, 0 }
  0x1c   : > { %227 = sbr.rel (%p1286_p11) target bundleno = 191 (0xbf), region = 16  ;;  %s2024_s11 = sand.u32 (!%p1286_p11), 1, %s1910_s23  }
  0x1d   : > { %s2027_s12 = sshll.u32 (!%p1286_p11), %s1914_s24, 7  ;;  %s2030_s13 = sshll.u32 (!%p1286_p11), %s2024_s11, 3 }
  0x1e   : > { %s2474_s14 = sand.u32 (!%p1286_p11), 1, %s1914_s24   ;;  %s2486_s1 = sld [smem:[#allocation21_spill]] (!%p1286_p11) }
  0x1f   : > { %s253_s18 = scalar_lea.vmem (!%p1286_p11), [#allocation5], %s2030_s13  ;;  %s2042_s20 = scalar_lea.sflag (!%p1286_p11), [#allocation6], %s2474_s14 }
  0x20   : > { %s260_s19 = sshll.u32 (!%p1286_p11), %s253_s18, 4  ;;  %s261_s19 = int_to_ptr.vmem [resolvable:$true] %s260_s19 }
  0x24   : > { %s2037_s17 = scalar_lea.hbm %s2486_s1, %s2027_s12  ;;  %s1672_s15 = scalar_lea.hbm %s2486_s1, 384 }
  0x25   : > { %s1668_s26 = scalar_lea.hbm %s2037_s17, 128  ;;  %p1673_p1 = scmp.lt.u32.totalorder %s2037_s17, %s2486_s1 }
  0x26   : > { %p1669_p12 = scmp.ne.s32.totalorder %s2037_s17, %s1668_s26  ;;  %p1674_p2 = scmp.lt.u32.totalorder %s1672_s15, %s1668_s26 }
  0x27   : > { %p1676_p4 = scmp.lt.u32.totalorder %s1668_s26, %s2037_s17 }
  0x28   : > { %p1670_p13 = pnand %p1669_p12, %p2005_p5  ;;  %p1675_p3 = por %p1674_p2, %p1673_p1 }
  0x2a   : > { %p1671_p0 = pneg %p1670_p13  ;;  %p1677_p7 = por %p1676_p4, %p1675_p3 }
  0x2c   : > { %p1678_p8 = pnand %p1677_p7, %p1671_p0 }
  0x2e   : > { %1681 = shalt.err (!%p1678_p8)
}
  0x2f   : > { %s1682_s18 = scalar_lea.vmem %s261_s19, 128  ;;  %s1916_s14 = smov [#allocation5]  }
  0x30   : > { %p1683_p11 = scmp.ne.s32.totalorder %s261_s19, %s1682_s18  ;;  %s1686_s23 = sshll.u32 %s1916_s14, 4  ;;  %s1687_s23 = int_to_ptr.vmem [resolvable:$false] %s1686_s23 }
  0x31   : > { %s1688_s28 = scalar_lea.vmem %s1687_s23, 256  ;;  %p1689_p10 = scmp.lt.s32.totalorder %s261_s19, %s1687_s23 }
  0x32   : > { %p1684_p12 = pnand %p1683_p11, %p2005_p5  ;;  %p1690_p9 = scmp.lt.s32.totalorder %s1688_s28, %s1682_s18 }
  0x34   : > { %p1685_p13 = pneg %p1684_p12  ;;  %p1691_p6 = por %p1690_p9, %p1689_p10 }
  0x36   : > { %p1692_p1 = pnand %p1691_p6, %p1685_p13 }
  0x38   : > { %1695 = shalt.err (!%p1692_p1)
}
  0x39   : > { %1608 = dma.hbm_to_vmem [thread:$0]  (%p2005_p5), %s2037_s17, 128, %s261_s19, %s2042_s20  }
  0x3a   : > { %s2487_s3 = sld [smem:[#allocation22_spill]]  ;;  %s289_s23 = scalar_lea.vmem [#allocation8], %s2030_s13 }
  0x3b   : > { %s296_s29 = sshll.u32 %s289_s23, 4  ;;  %s2488_s15 = sand.u32 1, %s1914_s24   ;;  %s297_s29 = int_to_ptr.vmem [resolvable:$true] %s296_s29 }
  0x3c   : > { %s2071_s16 = scalar_lea.sflag [#allocation9], %s2488_s15 }
  0x40   : > { %s2066_s14 = scalar_lea.hbm %s2487_s3, %s2027_s12  ;;  %s1700_s28 = scalar_lea.hbm %s2487_s3, 384 }
  0x41   : > { %s1696_s18 = scalar_lea.hbm %s2066_s14, 128  ;;  %p1701_p0 = scmp.lt.u32.totalorder %s2066_s14, %s2487_s3 }
  0x42   : > { %p1697_p6 = scmp.ne.s32.totalorder %s2066_s14, %s1696_s18  ;;  %p1702_p2 = scmp.lt.u32.totalorder %s1700_s28, %s1696_s18 }
  0x43   : > { %p1704_p4 = scmp.lt.u32.totalorder %s1696_s18, %s2066_s14 }
  0x44   : > { %p1698_p9 = pnand %p1697_p6, %p2005_p5  ;;  %p1703_p3 = por %p1702_p2, %p1701_p0 }
  0x46   : > { %p1699_p10 = pneg %p1698_p9  ;;  %p1705_p7 = por %p1704_p4, %p1703_p3 }
  0x48   : > { %p1706_p8 = pnand %p1705_p7, %p1699_p10 }
  0x4a   : > { %1709 = shalt.err (!%p1706_p8)
}
  0x4b   : > { %s1710_s23 = scalar_lea.vmem %s297_s29, 128  ;;  %s1917_s15 = smov [#allocation8]  }
  0x4c   : > { %p1711_p11 = scmp.ne.s32.totalorder %s297_s29, %s1710_s23  ;;  %s1714_s1 = sshll.u32 %s1917_s15, 4  ;;  %s1715_s1 = int_to_ptr.vmem [resolvable:$false] %s1714_s1 }
  0x4d   : > { %s1716_s17 = scalar_lea.vmem %s1715_s1, 256  ;;  %p1717_p1 = scmp.lt.s32.totalorder %s297_s29, %s1715_s1 }
  0x4e   : > { %p1712_p12 = pnand %p1711_p11, %p2005_p5  ;;  %p1718_p6 = scmp.lt.s32.totalorder %s1716_s17, %s1710_s23 }
  0x50   : > { %p1713_p13 = pneg %p1712_p12  ;;  %p1719_p9 = por %p1718_p6, %p1717_p1 }
  0x52   : > { %p1720_p0 = pnand %p1719_p9, %p1713_p13 }
  0x54   : > { %1723 = shalt.err (!%p1720_p0)
}
  0x55   : > { %1610 = dma.hbm_to_vmem [thread:$0]  (%p2005_p5), %s2066_s14, 128, %s297_s29, %s2071_s16  }
  0x56   : > { %s2095_s28 = scalar_lea.hbm %s2467_s0, %s2027_s12  ;;  %s235_s1 = scalar_lea.vmem [#allocation2], %s2030_s13 }
  0x57   : > { %s242_s30 = sshll.u32 %s235_s1, 4  ;;  %s232_s26 = scalar_lea.sflag [#allocation3], %s2024_s11  ;;  %s243_s30 = int_to_ptr.vmem [resolvable:$true] %s242_s30 }
  0x58   : > { %s1724_s23 = scalar_lea.hbm %s2095_s28, 128  ;;  %s1728_s29 = scalar_lea.hbm %s2467_s0, 384 }
  0x59   : > { %p1725_p10 = scmp.ne.s32.totalorder %s2095_s28, %s1724_s23  ;;  %p1729_p4 = scmp.lt.u32.totalorder %s2095_s28, %s2467_s0 }
  0x5a   : > { %p1730_p7 = scmp.lt.u32.totalorder %s1728_s29, %s1724_s23  ;;  %p1732_p11 = scmp.lt.u32.totalorder %s1724_s23, %s2095_s28 }
  0x5b   : > { %p1726_p2 = pnand %p1725_p10, %p2005_p5 }
  0x5c   : > { %p1731_p8 = por %p1730_p7, %p1729_p4 }
  0x5d   : > { %p1727_p3 = pneg %p1726_p2 }
  0x5e   : > { %p1733_p12 = por %p1732_p11, %p1731_p8 }
  0x60   : > { %p1734_p13 = pnand %p1733_p12, %p1727_p3 }
  0x62   : > { %1737 = shalt.err (!%p1734_p13)
}
  0x63   : > { %s1738_s19 = scalar_lea.vmem %s243_s30, 128  ;;  %s1918_s1 = smov [#allocation2]  }
  0x64   : > { %p1739_p1 = scmp.ne.s32.totalorder %s243_s30, %s1738_s19  ;;  %s1742_s3 = sshll.u32 %s1918_s1, 4  ;;  %s1743_s3 = int_to_ptr.vmem [resolvable:$false] %s1742_s3 }
  0x65   : > { %s1744_s15 = scalar_lea.vmem %s1743_s3, 256  ;;  %p1745_p0 = scmp.lt.s32.totalorder %s243_s30, %s1743_s3 }
  0x66   : > { %p1740_p6 = pnand %p1739_p1, %p2005_p5  ;;  %p1746_p10 = scmp.lt.s32.totalorder %s1744_s15, %s1738_s19 }
  0x68   : > { %p1741_p9 = pneg %p1740_p6  ;;  %p1747_p2 = por %p1746_p10, %p1745_p0 }
  0x6a   : > { %p1748_p4 = pnand %p1747_p2, %p1741_p9 }
  0x6c   : > { %1751 = shalt.err (!%p1748_p4)
}
  0x6d   : > { %1607 = dma.hbm_to_vmem [thread:$0]  (%p2005_p5), %s2095_s28, 128, %s243_s30, %s232_s26  }
  0x6e   : > { %s2120_s29 = scalar_lea.hbm %s2469_s2, %s2027_s12  ;;  %s271_s3 = scalar_lea.vmem [#allocation7], %s2030_s13 }
  0x6f   : > { %s278_s17 = sshll.u32 %s271_s3, 4  ;;  %s1752_s18 = scalar_lea.hbm %s2120_s29, 128  ;;  %s279_s17 = int_to_ptr.vmem [resolvable:$true] %s278_s17 }
  0x70   : > { %p1753_p3 = scmp.ne.s32.totalorder %s2120_s29, %s1752_s18  ;;  %s1756_s28 = scalar_lea.hbm %s2469_s2, 384 }
  0x71   : > { %p1757_p11 = scmp.lt.u32.totalorder %s2120_s29, %s2469_s2  ;;  %p1758_p12 = scmp.lt.u32.totalorder %s1756_s28, %s1752_s18 }
  0x72   : > { %p1754_p7 = pnand %p1753_p3, %p2005_p5  ;;  %p1760_p1 = scmp.lt.u32.totalorder %s1752_s18, %s2120_s29 }
  0x73   : > { %p1759_p13 = por %p1758_p12, %p1757_p11 }
  0x74   : > { %p1755_p8 = pneg %p1754_p7 }
  0x75   : > { %p1761_p6 = por %p1760_p1, %p1759_p13 }
  0x77   : > { %p1762_p9 = pnand %p1761_p6, %p1755_p8 }
  0x79   : > { %1765 = shalt.err (!%p1762_p9)
}
  0x7a   : > { %s1766_s15 = scalar_lea.vmem %s279_s17, 128  ;;  %s1919_s23 = smov [#allocation7]  }
  0x7b   : > { %p1767_p0 = scmp.ne.s32.totalorder %s279_s17, %s1766_s15  ;;  %s1770_s14 = sshll.u32 %s1919_s23, 4  ;;  %s1771_s14 = int_to_ptr.vmem [resolvable:$false] %s1770_s14 }
  0x7c   : > { %s1772_s3 = scalar_lea.vmem %s1771_s14, 256  ;;  %p1773_p4 = scmp.lt.s32.totalorder %s279_s17, %s1771_s14 }
  0x7d   : > { %p1768_p10 = pnand %p1767_p0, %p2005_p5  ;;  %p1774_p3 = scmp.lt.s32.totalorder %s1772_s3, %s1766_s15 }
  0x7f   : > { %p1769_p2 = pneg %p1768_p10  ;;  %p1775_p7 = por %p1774_p3, %p1773_p4 }
  0x81   : > { %p1776_p11 = pnand %p1775_p7, %p1769_p2 }
  0x83   : > { %1779 = shalt.err (!%p1776_p11)
}
  0x84   : > { %1609 = dma.hbm_to_vmem [thread:$0]  (%p2005_p5), %s2120_s29, 128, %s279_s17, %s2042_s20  }
  0x85   : > { %s2145_s1 = scalar_lea.hbm %s2471_s4, %s2027_s12  ;;  %s307_s28 = scalar_lea.vmem [#allocation10], %s2030_s13 }
  0x86   : > { %s314_s30 = sshll.u32 %s307_s28, 4  ;;  %s1780_s26 = scalar_lea.hbm %s2145_s1, 128  ;;  %s315_s30 = int_to_ptr.vmem [resolvable:$true] %s314_s30 }
  0x87   : > { %p1781_p8 = scmp.ne.s32.totalorder %s2145_s1, %s1780_s26  ;;  %s1784_s20 = scalar_lea.hbm %s2471_s4, 384 }
  0x88   : > { %p1785_p1 = scmp.lt.u32.totalorder %s2145_s1, %s2471_s4  ;;  %p1786_p6 = scmp.lt.u32.totalorder %s1784_s20, %s1780_s26 }
  0x89   : > { %p1782_p12 = pnand %p1781_p8, %p2005_p5  ;;  %p1788_p0 = scmp.lt.u32.totalorder %s1780_s26, %s2145_s1 }
  0x8a   : > { %p1787_p9 = por %p1786_p6, %p1785_p1 }
  0x8b   : > { %p1783_p13 = pneg %p1782_p12 }
  0x8c   : > { %p1789_p10 = por %p1788_p0, %p1787_p9 }
  0x8e   : > { %p1790_p2 = pnand %p1789_p10, %p1783_p13 }
  0x90   : > { %1793 = shalt.err (!%p1790_p2)
}
  0x91   : > { %s1794_s12 = scalar_lea.vmem %s315_s30, 128  ;;  %s1920_s13 = smov [#allocation10]  }
  0x92   : > { %p1795_p4 = scmp.ne.s32.totalorder %s315_s30, %s1794_s12  ;;  %s1798_s14 = sshll.u32 %s1920_s13, 4  ;;  %s1799_s14 = int_to_ptr.vmem [resolvable:$false] %s1798_s14 }
  0x93   : > { %s1800_s3 = scalar_lea.vmem %s1799_s14, 256  ;;  %p1801_p11 = scmp.lt.s32.totalorder %s315_s30, %s1799_s14 }
  0x94   : > { %p1796_p3 = pnand %p1795_p4, %p2005_p5  ;;  %p1802_p8 = scmp.lt.s32.totalorder %s1800_s3, %s1794_s12 }
  0x96   : > { %p1797_p7 = pneg %p1796_p3  ;;  %p1803_p12 = por %p1802_p8, %p1801_p11 }
  0x98   : > { %p1804_p1 = pnand %p1803_p12, %p1797_p7 }
  0x9a   : > { %1807 = shalt.err (!%p1804_p1)
}
  0x9b   : > { %1611 = dma.hbm_to_vmem [thread:$0]  (%p2005_p5), %s2145_s1, 128, %s315_s30, %s2071_s16  }
  0x9c   : > { %320 = sbr.rel (!%p2005_p5) target bundleno = 191 (0xbf), region = 40  ;;  %s1297_s18 = sshll.u32 (%p2005_p5), %s2024_s11, 6 }
  0x9d   : > { %s1298_s19 = sshll.u32 (%p2005_p5), %s1914_s24, 3  ;;  %s322_s23 = scalar_lea.sflag (%p2005_p5), [#allocation12], %s2024_s11 }
  0x9e   : > { %s327_s28 = ssub.s32 (%p2005_p5), 20, %s1298_s19  ;;  %s325_s20 = scalar_lea.vmem (%p2005_p5), [#allocation11], %s1297_s18 }
  0x9f   : > { %p328_p13 = scmp.lt.s32.totalorder (%p2005_p5), %s327_s28, 8 }
  0xa3   : > { %s2498_s28 = smov (!%p328_p13, %s327_s28), 8 }
  0xa4   : > { %s2170_s26 = sshll.u32 %s2498_s28, 7 }
  0xa5   : > { %s332_s15 = ssub.s32 1024, %s2170_s26 }
  0xa6   : > { %333 = vsyncadd %s322_s23, %s332_s15  ;;  %p1300_p5 = scmp.ne.s32.totalorder %s2170_s26, 0  ;;  %s1318_s7 = sshll.u32 %s1914_s24, 10 }
  0xa7   : > { %s2181_s30 = scalar_lea.hbm %s2472_s5, %s1318_s7  ;;  %s338_s29 = sshll.u32 %s325_s20, 4  ;;  %s2183_s29 = int_to_ptr.vmem [resolvable:$true] %s338_s29 }
  0xa8   : > { %s1808_s17 = scalar_lea.hbm %s2181_s30, %s2170_s26  ;;  %s1812_s14 = scalar_lea.hbm %s2472_s5, 2560 }
  0xa9   : > { %p1809_p6 = scmp.ne.s32.totalorder %s2181_s30, %s1808_s17  ;;  %p1813_p10 = scmp.lt.u32.totalorder %s2181_s30, %s2472_s5 }
  0xaa   : > { %p1814_p2 = scmp.lt.u32.totalorder %s1812_s14, %s1808_s17  ;;  %p1816_p3 = scmp.lt.u32.totalorder %s1808_s17, %s2181_s30 }
  0xab   : > { %p1810_p9 = pnand %p1809_p6, %p1300_p5 }
  0xac   : > { %p1815_p4 = por %p1814_p2, %p1813_p10 }
  0xad   : > { %p1811_p0 = pneg %p1810_p9 }
  0xae   : > { %p1817_p7 = por %p1816_p3, %p1815_p4 }
  0xb0   : > { %p1818_p11 = pnand %p1817_p7, %p1811_p0 }
  0xb2   : > { %1821 = shalt.err (!%p1818_p11)
}
  0xb3   : > { %s1822_s19 = scalar_lea.vmem %s2183_s29, %s2170_s26  ;;  %s1921_s28 = smov [#allocation11]  }
  0xb4   : > { %p1823_p8 = scmp.ne.s32.totalorder %s2183_s29, %s1822_s19  ;;  %s1826_s15 = sshll.u32 %s1921_s28, 4  ;;  %s1827_s15 = int_to_ptr.vmem [resolvable:$false] %s1826_s15 }
  0xb5   : > { %s1828_s20 = scalar_lea.vmem %s1827_s15, 2048  ;;  %p1829_p13 = scmp.lt.s32.totalorder %s2183_s29, %s1827_s15 }
  0xb6   : > { %p1824_p12 = pnand %p1823_p8, %p1300_p5  ;;  %p1830_p6 = scmp.lt.s32.totalorder %s1828_s20, %s1822_s19 }
  0xb8   : > { %p1825_p1 = pneg %p1824_p12  ;;  %p1831_p9 = por %p1830_p6, %p1829_p13 }
  0xba   : > { %p1832_p10 = pnand %p1831_p9, %p1825_p1 }
  0xbc   : > { %1835 = shalt.err (!%p1832_p10)
}
  0xbd   : > { %s1922_s7 = smov 128   ;;  %s1923_s16 = smov 8  }
  0xbe   : > { %344 = dma.hbm_to_vmem [thread:$0]  (%p1300_p5), %s2181_s30, %s2170_s26, %s2183_s29, %s322_s23, %s1922_s7, %s1922_s7, %s1923_s16  }
  0xbf PF: > { %p1304_p0 = scmp.ge.s32.totalorder %s1914_s24, 1  ;;  %p346_p2 = scmp.lt.s32.totalorder %s1914_s24, 4 }
  0xc1   : > { %p347_p4 = pnand %p1304_p0, %p346_p2 }
  0xc2   : > { %s2214_s1 = sand.u32 (!%p347_p4), 1, %s1906_s22   ;;  %p2489_p5 = scmp.ne.s32.totalorder (!%p347_p4), %s2483_s8, 0 }
  0xc3   : > { %350 = sbr.rel (%p347_p4) target bundleno = 670 (0x29e), region = 44  ;;  %s2217_s17 = sshll.u32 (!%p347_p4), %s2214_s1, 3 }
  0xc4   : > { %s353_s12 = scalar_lea.sflag (!%p347_p4), [#allocation3], %s2214_s1  ;;  %s356_s11 = scalar_lea.vmem (!%p347_p4), [#allocation2], %s2217_s17 }
  0xca   : > { %1881 = dma.done.wait (%p2489_p5), %s353_s12, 128  }
  0xcb   : > { %1883 = vsyncadd (%p2489_p5), %s353_s12, 4294967168  ;;  %s361_s26 = sand.u32 1, %s1987_s25   ;;  %s365_s30 = scalar_lea.vmem [#allocation5], %s2217_s17 }
  0xcc   : > { %s362_s23 = scalar_lea.sflag [#allocation6], %s361_s26 }
  0xcd   : > { %1885 = dma.done.wait (%p2489_p5), %s362_s23, 256  }
  0xce   : > { %1887 = vsyncadd (%p2489_p5), %s362_s23, 4294967040  ;;  %s374_s29 = scalar_lea.vmem [#allocation7], %s2217_s17  ;;  %s380_s13 = scalar_lea.sflag [#allocation9], %s361_s26 }
  0xcf   : > { %s383_s14 = scalar_lea.vmem [#allocation8], %s2217_s17 }
  0xd0   : > { %1889 = dma.done.wait (%p2489_p5), %s380_s13, 256  }
  0xd1   : > { %1891 = vsyncadd (%p2489_p5), %s380_s13, 4294967040  ;;  %s1310_s3 = sshll.u32 %s2214_s1, 6  ;;  %s392_s18 = scalar_lea.vmem [#allocation10], %s2217_s17 }
  0xd2   : > { %s398_s19 = scalar_lea.sflag [#allocation12], %s2214_s1  ;;  %s2240_s28 = scalar_lea.vmem [#allocation11], %s1310_s3 }
  0xd3   : > { %1893 = dma.done.wait (%p2489_p5), %s398_s19, 1024  }
  0xd4   : > { %1895 = vsyncadd (%p2489_p5), %s398_s19, 4294966272  ;;  %v1924_v0 = vmov 0.0|0.0   ;;  %v1925_v1 = vmov 1.0|1.0   ;;  %vm1926_vm0 = vmmov 0   ;;  %v1927_v2 = vmov 0.0  }
  0xd5   : > { %1543 = vmatprep.subr.bf16.mxu0 %v1924_v0  ;;  %1559 = vmatprep.subr.bf16.mxu1 %v1924_v0  ;;  %v690_v3 = vlaneseq  ;;  %v1928_v4 = vmov 1966171168   ;;  %v2269_v9 = vld [vmem:[%s392_s18] sm:$0xff]  ;;  %v2299_v16 = vld [vmem:[%s383_s14] sm:$0xff]  ;;  %s1313_s8 = sshll.u32 %s1987_s25, 6  ;;  %s1312_s15 = sshll.u32 %s1987_s25, 3 }
  0xd6   : > { %1544 = vmatpush3.bf16.msra.mxu0 %v1925_v1  ;;  %1560 = vmatpush3.bf16.msra.mxu1 %v1925_v1  ;;  %v699_v5 = vunpack.c.l.s4 %v1928_v4  ;;  %v2283_v11 = vld [vmem:[%s356_s11] sm:$0xff]  ;;  %v462_v17 = vld [vmem:[%s365_s30] sm:$0xff]  ;;  %v747_v29 = vcombine.high %v2269_v9, %v2269_v9  ;;  %v609_v45 = vsub.f32 %v2299_v16, %v2269_v9  ;;  %vm1054_vm2 = vcmask 7168   ;;  %s454_s20 = scalar_lea.vmem [#allocation13], %s2217_s17  ;;  %s1315_s16 = sshll.u32 %s1987_s25, 7 }
  0xd7   : > { %1545 = vmatprep.subr.bf16.mxu0 %v1924_v0  ;;  %1561 = vmatprep.subr.bf16.mxu1 %v1924_v0  ;;  %v2258_v6 = vshrl.u32 %v690_v3, 7  ;;  %v463_v15 = vld [vmem:[%s374_s29] sm:$0xff]  ;;  %v796_v22 = vld [vmem:[%s2240_s28] sm:$0xff]  ;;  %v697_v32 = vcombine.high %v2283_v11, %v2283_v11  ;;  %v797_v38 = vld [vmem:[%s2240_s28 + $0x8] sm:$0xff]  ;;  %s1105_s7 = sshll.u32 %s454_s20, 4  ;;  %s2426_s26 = scalar_lea.hbm %s2473_s6, %s1315_s16  ;;  %s2421_s7 = int_to_ptr.vmem [resolvable:$true] %s1105_s7 }
  0xd8   : > { %1461 = vmatprep.mubr.msk.f32.mxu1 %vm1926_vm0, %v1927_v2  ;;  %1426 = vmatprep.mubr.msk.f32.mxu0 %vm1926_vm0, %v1927_v2  ;;  %v700_v7 = vunpack.c.0.s8 %v699_v5  ;;  %v537_v20 = vsub.f32 %v463_v15, %v2299_v16  ;;  %v464_v21 = vsub.f32 %v462_v17, %v463_v15  ;;  %v798_v43 = vld [vmem:[%s2240_s28 + $0x10] sm:$0xff]  ;;  %v799_v55 = vld [vmem:[%s2240_s28 + $0x18] sm:$0xff]  ;;  %v610_v58 = vmul.f32 %v609_v45, %v2283_v11  ;;  %v800_v59 = vld [vmem:[%s2240_s28 + $0x20] sm:$0xff]  ;;  %s1092_s23 = scalar_lea.sflag [#allocation4], %s2214_s1  ;;  %s1836_s30 = scalar_lea.vmem %s2421_s7, 128 }
  0xd9   : > { %v2291_v14 = vsub.s32 0, %v2258_v6  ;;  %v1026_v45 = vadd.s32 40, %v2258_v6  ;;  %p1837_p3 = scmp.ne.s32.totalorder %s2421_s7, %s1836_s30  ;;  %p2490_p7 = scmp.ne.s32.totalorder %s2484_s9, 0 }
  0xda   : > { %1546 = vmatpush3.bf16.msra.mxu0 %v1925_v1  ;;  %1562 = vmatpush3.bf16.msra.mxu1 %v1925_v1  ;;  %v2265_v8 = vsub.s32 %v700_v7, %v2258_v6  ;;  %v538_v25 = vmul.f32 %v537_v20, %v2283_v11  ;;  %v465_v26 = vmul.f32 %v464_v21, %v2283_v11  ;;  %v801_v7 = vld [vmem:[%s2240_s28 + $0x28] sm:$0xff]  ;;  %s1930_s17 = smov [#allocation13]  }
  0xdb   : > { %1547 = vmatprep.subr.bf16.mxu0 %v1924_v0  ;;  %1563 = vmatprep.subr.bf16.mxu1 %v1924_v0  ;;  %p1838_p11 = pnand %p1837_p3, %p2490_p7  ;;  %s1840_s25 = sshll.u32 %s1930_s17, 4  ;;  %s1841_s25 = int_to_ptr.vmem [resolvable:$false] %s1840_s25 }
  0xdc   : > { %v754_v10 = vrot.slane %v2269_v9, %v2265_v8  ;;  %v704_v12 = vrot.slane %v2283_v11, %v2265_v8  ;;  %v761_v34 = vrot.slane %v747_v29, %v2265_v8  ;;  %v711_v37 = vrot.slane %v697_v32, %v2265_v8  ;;  %v802_v11 = vld [vmem:[%s2240_s28 + $0x30] sm:$0xff]  ;;  %s1842_s29 = scalar_lea.vmem %s1841_s25, 256  ;;  %p1843_p12 = scmp.lt.s32.totalorder %s2421_s7, %s1841_s25 }
  0xdd   : > { %p1839_p8 = pneg %p1838_p11  ;;  %p1844_p1 = scmp.lt.s32.totalorder %s1842_s29, %s1836_s30 }
  0xde   : > { %1548 = vmatpush3.bf16.msra.mxu0 %v1925_v1  ;;  %1564 = vmatpush3.bf16.msra.mxu1 %v1925_v1  ;;  %v2288_v13 = vrot.slane %v754_v10, %v2265_v8  ;;  %v2306_v18 = vrot.slane %v704_v12, %v2265_v8  ;;  %v762_v28 = vcombine.high %v754_v10, %v754_v10 }
  0xdf   : > { %1549 = vmatprep.subr.bf16.mxu0 %v1924_v0  ;;  %1565 = vmatprep.subr.bf16.mxu1 %v1924_v0  ;;  %v712_v30 = vcombine.high %v704_v12, %v704_v12  ;;  %v763_v42 = vcombine.high %v761_v34, %v761_v34  ;;  %v777_v44 = vrot.slane %v761_v34, %v2265_v8  ;;  %p1845_p13 = por %p1844_p1, %p1843_p12 }
  0xe0   : > { %v807_v19 = vrot.slane %v2288_v13, %v2291_v14  ;;  %v855_v24 = vrot.slane %v2306_v18, %v2291_v14  ;;  %v784_v31 = vrot.slane %v762_v28, %v2265_v8  ;;  %v792_v33 = vcombine.high %v2288_v13, %v2288_v13 }
  0xe1   : > { %v734_v35 = vrot.slane %v712_v30, %v2265_v8  ;;  %v742_v39 = vcombine.high %v2306_v18, %v2306_v18  ;;  %v727_v49 = vrot.slane %v711_v37, %v2265_v8  ;;  %v713_v50 = vcombine.high %v711_v37, %v711_v37  ;;  %p1846_p6 = pnand %p1845_p13, %p1839_p8 }
  0xe2   : > { %1550 = vmatpush3.bf16.msra.mxu0 %v1925_v1  ;;  %1566 = vmatpush3.bf16.msra.mxu1 %v1925_v1  ;;  %v844_v23 = vsub.f32 %v807_v19, %v796_v22  ;;  %v811_v36 = vrot.slane %v784_v31, %v2291_v14  ;;  %v815_v40 = vrot.slane %v792_v33, %v2291_v14  ;;  %v803_v19 = vld [vmem:[%s2240_s28 + $0x38] sm:$0xff]  ;;  %v692_v37 = vstv %s1312_s15 }
  0xe3   : > { %1551 = vmatprep.subr.bf16.mxu0 %v1924_v0  ;;  %1567 = vmatprep.subr.bf16.mxu1 %v1924_v0  ;;  %v794_v41 = vcombine.high %v784_v31, %v784_v31  ;;  %v859_v46 = vrot.slane %v734_v35, %v2291_v14  ;;  %v744_v48 = vcombine.high %v734_v35, %v734_v35  ;;  %v1029_v35 = vstv %s1313_s8 }
  0xe4   : > { %v892_v27 = vmul.f32 %v855_v24, %v844_v23  ;;  %v845_v47 = vsub.f32 %v811_v36, %v797_v38  ;;  %v846_v51 = vsub.f32 %v815_v40, %v798_v43  ;;  %v863_v52 = vrot.slane %v742_v39, %v2291_v14 }
  0xe5   : > { %v819_v53 = vrot.slane %v794_v41, %v2291_v14  ;;  %v791_v54 = vrot.slane %v763_v42, %v2265_v8  ;;  %v823_v56 = vrot.slane %v777_v44, %v2291_v14  ;;  %v793_v57 = vcombine.high %v777_v44, %v777_v44 }
  0xe6   : > { %1552 = vmatpush3.bf16.msra.mxu0 %v1925_v1  ;;  %1568 = vmatpush3.bf16.msra.mxu1 %v1925_v1  ;;  %v893_v60 = vmul.f32 %v859_v46, %v845_v47  ;;  %v867_v61 = vrot.slane %v744_v48, %v2291_v14  ;;  %v871_v62 = vrot.slane %v727_v49, %v2291_v14  ;;  %v1024_v36 = vadd.s32 24, %v2258_v6 }
  0xe7   : > { %1553 = vmatprep.subr.bf16.mxu0 %v1924_v0  ;;  %1569 = vmatprep.subr.bf16.mxu1 %v1924_v0  ;;  %v741_v63 = vrot.slane %v713_v50, %v2265_v8  ;;  %v847_v3 = vsub.f32 %v819_v53, %v799_v55  ;;  %v827_v4 = vrot.slane %v791_v54, %v2291_v14  ;;  %v1023_v39 = vadd.s32 16, %v2258_v6 }
  0xe8   : > { %v795_v5 = vcombine.high %v791_v54, %v791_v54  ;;  %v743_v9 = vcombine.high %v727_v49, %v727_v49  ;;  %v831_v10 = vrot.slane %v793_v57, %v2291_v14  ;;  %v1030_v40 = vadd.s32 %v1029_v35, %v2258_v6 }
  0xe9   : > { %v875_v12 = vrot.slane %v741_v63, %v2291_v14  ;;  %v745_v13 = vcombine.high %v741_v63, %v741_v63  ;;  %v895_v8 = vmul.f32 %v867_v61, %v847_v3  ;;  %v849_v15 = vsub.f32 %v827_v4, %v801_v7 }
  0xea   : > { %1554 = vmatpush3.bf16.msra.mxu0 %v1925_v1  ;;  %1570 = vmatpush3.bf16.msra.mxu1 %v1925_v1  ;;  %v835_v16 = vrot.slane %v795_v5, %v2291_v14  ;;  %v850_v18 = vsub.f32 %v831_v10, %v802_v11  ;;  %v693_v42 = vadd.s32 %v692_v37, %v2258_v6  ;;  %v1025_v46 = vadd.s32 32, %v2258_v6 }
  0xeb   : > { %1555 = vmatprep.subr.bf16.mxu0 %v1924_v0  ;;  %1571 = vmatprep.subr.bf16.mxu1 %v1924_v0  ;;  %v897_v20 = vmul.f32 %v875_v12, %v849_v15  ;;  %v883_v22 = vrot.slane %v745_v13, %v2291_v14  ;;  %v1033_v44 = vadd.s32 %v1029_v35, %v1024_v36  ;;  %vm1038_vm3 = vcmp.lt.s32.totalorder %v1030_v40, 160 }
  0xec   : > { %v851_v21 = vsub.f32 %v835_v16, %v803_v19  ;;  %vm694_vm4 = vcmp.lt.s32.totalorder %v693_v42, 20  ;;  %v1035_v57 = vadd.s32 %v1029_v35, %v1026_v45  ;;  %v1027_v7 = vadd.s32 48, %v2258_v6 }
  0xed   : > { %vm1041_vm5 = vcmp.lt.s32.totalorder %v1033_v44, 160 }
  0xee   : > { %1556 = vmatpush3.bf16.msra.mxu0 %v1925_v1  ;;  %1572 = vmatpush3.bf16.msra.mxu1 %v1925_v1  ;;  %v899_v24 = vmul.f32 %v883_v22, %v851_v21  ;;  %vm1043_vm7 = vcmp.lt.s32.totalorder %v1035_v57, 160 }
  0xef   : > { %1557 = vmatprep.subr.bf16.mxu0 %v1924_v0  ;;  %1573 = vmatprep.subr.bf16.mxu1 %v1924_v0 }
  0xf2   : > { %1558 = vmatpush3.bf16.msra.mxu0 %v1925_v1  ;;  %1574 = vmatpush3.bf16.msra.mxu1 %v1925_v1 }
  0xf3   : > { %1575 = vmatprep.subr.bf16.mxu0 %v1924_v0  ;;  %1591 = vmatprep.subr.bf16.mxu1 %v1925_v1 }
  0xf5   : > { %1462 = vmatmul.mubr.f32.vlgmr.msra.gmra.mrb[0].mxu1 %v538_v25  ;;  %1427 = vmatmul.mubr.f32.vlgmr.msra.gmra.mrb[0].mxu0 %v465_v26  ;;  %v1929_v25 = vmov 0  }
  0xf6   : > { %1576 = vmatpush3.bf16.msra.mxu0 %v1925_v1  ;;  %1592 = vmatpush3.bf16.msra.mxu1 %v1925_v1 }
  0xf7   : > { %1577 = vmatprep.subr.bf16.mxu0 %v1924_v0  ;;  %1593 = vmatprep.subr.bf16.mxu1 %v1925_v1 }
  0xf8   : > { %1496 = vmatprep.mubr.msk.f32.mxu0 %vm1926_vm0, %v1927_v2  ;;  %1531 = vmatprep.mubr.f32.mxu1 %v892_v27  ;;  %v894_v2 = vmul.f32 %v863_v52, %v846_v51  ;;  %v1032_v52 = vadd.s32 %v1029_v35, %v1023_v39 }
  0xf9   : > { %1665 = vset.pattern.permute.xlu0 %v1929_v25 }
  0xfa   : > { %1578 = vmatpush3.bf16.msra.mxu0 %v1925_v1  ;;  %1594 = vmatpush3.bf16.msra.mxu1 %v1925_v1  ;;  %vm1040_vm6 = vcmp.lt.s32.totalorder %v1032_v52, 160 }
  0xfb   : > { %1579 = vmatprep.subr.bf16.mxu0 %v1924_v0  ;;  %1595 = vmatprep.subr.bf16.mxu1 %v1925_v1 }
  0xfe   : > { %1580 = vmatpush3.bf16.msra.mxu0 %v1925_v1  ;;  %1596 = vmatpush3.bf16.msra.mxu1 %v1925_v1 }
  0xff   : > { %1581 = vmatprep.subr.bf16.mxu0 %v1924_v0  ;;  %1597 = vmatprep.subr.bf16.mxu1 %v1925_v1 }
 0x102   : > { %1582 = vmatpush3.bf16.msra.mxu0 %v1925_v1  ;;  %1598 = vmatpush3.bf16.msra.mxu1 %v1925_v1 }
 0x103   : > { %1583 = vmatprep.subr.bf16.mxu0 %v1924_v0  ;;  %1599 = vmatprep.subr.bf16.mxu1 %v1925_v1 }
 0x106   : > { %1584 = vmatpush3.bf16.msra.mxu0 %v1925_v1  ;;  %1600 = vmatpush3.bf16.msra.mxu1 %v1925_v1 }
 0x107   : > { %1585 = vmatprep.subr.bf16.mxu0 %v1924_v0  ;;  %1601 = vmatprep.subr.bf16.mxu1 %v1925_v1 }
 0x10a   : > { %1586 = vmatpush3.bf16.msra.mxu0 %v1925_v1  ;;  %1602 = vmatpush3.bf16.msra.mxu1 %v1925_v1 }
 0x10b   : > { %1587 = vmatprep.subr.bf16.mxu0 %v1924_v0  ;;  %1603 = vmatprep.subr.bf16.mxu1 %v1925_v1 }
 0x10e   : > { %1588 = vmatpush3.bf16.msra.mxu0 %v1925_v1  ;;  %1604 = vmatpush3.bf16.msra.mxu1 %v1925_v1 }
 0x10f   : > { %1589 = vmatprep.subr.bf16.mxu0 %v1924_v0  ;;  %1605 = vmatprep.subr.bf16.mxu1 %v1925_v1  ;;  %v848_v0 = vsub.f32 %v823_v56, %v800_v59 }
 0x111   : > { %v896_v17 = vmul.f32 %v871_v62, %v848_v0  ;;  %v1034_v62 = vadd.s32 %v1029_v35, %v1025_v46  ;;  %v1028_v0 = vadd.s32 56, %v2258_v6 }
 0x112   : > { %1590 = vmatpush3.bf16.msra.mxu0 %v1925_v1  ;;  %1606 = vmatpush3.bf16.msra.mxu1 %v1925_v1  ;;  %v879_v1 = vrot.slane %v743_v9, %v2291_v14  ;;  %v1022_v14 = vadd.s32 8, %v2258_v6 }
 0x113   : > { %vm1042_vm8 = vcmp.lt.s32.totalorder %v1034_v62, 160  ;;  %v1037_v19 = vadd.s32 %v1029_v35, %v1028_v0 }
 0x114   : > { %v898_v23 = vmul.f32 %v879_v1, %v850_v18  ;;  %v1031_v38 = vadd.s32 %v1029_v35, %v1022_v14 }
 0x115   : > { %1497 = vmatmul.mubr.f32.vlgmr.msra.gmra.mrb[2].mxu0 %v610_v58  ;;  %1532 = vmatmul.mubr.f32.vlgmr.msra.gmra.mrb[2].mxu1 %v893_v60  ;;  %vm1045_vm9 = vcmp.lt.s32.totalorder %v1037_v19, 160 }
 0x116   : > { %1534 = vmatprep.mubr.f32.mxu1 %v894_v2  ;;  %vm1039_vm1 = vcmp.lt.s32.totalorder %v1031_v38, 160 }
 0x119   : > { %1535 = vmatmul.mubr.f32.gmra.mrb[4].mxu1 %v895_v8 }
 0x11a   : > { %1537 = vmatprep.mubr.f32.mxu1 %v896_v17 }
 0x11d   : > { %1538 = vmatmul.mubr.f32.gmra.mrb[6].mxu1 %v897_v20  ;;  %v1036_v20 = vadd.s32 %v1029_v35, %v1027_v7 }
 0x11e   : > { %1540 = vmatprep.mubr.f32.mxu1 %v898_v23 }
 0x11f   : > { %vm1044_vm10 = vcmp.lt.s32.totalorder %v1036_v20, 160 }
 0x121   : > { %1541 = vmatmul.mubr.f32.gmra.mrb[8].mxu1 %v899_v24 }
 0x1c8   : > { %v605_v26 = vpop.f32.mrb[0].mxu1  ;;  %v532_v27 = vpop.f32.mrb[0].mxu0 }
 0x1c9   : > { %v683_v28 = vsub.f32 0.1, %v605_v26  ;;  %v681_v29 = vsub.f32 0.2, %v532_v27  ;;  %v1463_v30 = vpop.f32.mrb[1].mxu1  ;;  %v1428_v31 = vpop.f32.mrb[1].mxu0 }
 0x1cb   : > { %v684_v32 = vmax.f32 %v683_v28, 0.0  ;;  %v682_v33 = vmax.f32 %v681_v29, 0.0 }
 0x1cd   : > { %v685_v34 = vadd.f32 %v684_v32, %v682_v33 }
 0x1e8   : > { %v677_v41 = vpop.f32.mrb[2].mxu0  ;;  %v1533_v43 = vpop.f32.mrb[2].mxu1 }
 0x1e9   : > { %v686_v47 = vsub.f32 0.15, %v677_v41  ;;  %v1006_v48 = vsub.f32 0.3, %v1533_v43  ;;  %v966_v49 = vpop.f32.mrb[3].mxu1  ;;  %v1498_v50 = vpop.f32.mrb[3].mxu0 }
 0x1ea   : > { %v1005_v51 = vsub.f32 0.3, %v966_v49 }
 0x1eb   : > { %v687_v53 = vmax.f32 %v686_v47, 0.0  ;;  %v1014_v54 = vmax.f32 %v1006_v48, 0.0 }
 0x1ec   : > { %v1013_v55 = vmax.f32 %v1005_v51, 0.0  ;;  %v1536_v56 = vpop.f32.mrb[4].mxu1 }
 0x1ed   : > { %v688_v58 = vadd.f32 %v687_v53, %v685_v34  ;;  %v1047_v59 = vsel %vm1039_vm1, %v1014_v54, 0.0  ;;  %v1008_v60 = vsub.f32 0.3, %v1536_v56  ;;  %v976_v61 = vpop.f32.mrb[5].mxu1 }
 0x1ee   : > { %v1063_v63 = vsel %vm1054_vm2, %v1047_v59, 0.0  ;;  %v1046_v2 = vsel %vm1038_vm3, %v1013_v55, 0.0  ;;  %v1007_v3 = vsub.f32 0.3, %v976_v61 }
 0x1ef   : > { %v1062_v4 = vsel %vm1054_vm2, %v1046_v2, 0.0  ;;  %v1016_v5 = vmax.f32 %v1008_v60, 0.0  ;;  %v695_v8 = vsel %vm694_vm4, %v688_v58, 0.0 }
 0x1f0   : > { %v1064_v9 = vadd.f32 %v1063_v63, %v1062_v4  ;;  %v1015_v10 = vmax.f32 %v1007_v3, 0.0  ;;  %v1539_v11 = vpop.f32.mrb[6].mxu1  ;;  %v1055_v23 = vsel %vm1054_vm2, %v695_v8, 0.0 }
 0x1f1   : > { %v1010_v12 = vsub.f32 0.3, %v1539_v11  ;;  %v986_v13 = vpop.f32.mrb[7].mxu1  ;;  %v1049_v15 = vsel %vm1041_vm5, %v1016_v5, 0.0  ;;  %v1056_v33 = vrot.slane %v1055_v23, 4 }
 0x1f2   : > { %v1048_v16 = vsel %vm1040_vm6, %v1015_v10, 0.0  ;;  %v1009_v17 = vsub.f32 0.3, %v986_v13  ;;  %v1067_v24 = vsel %vm1054_vm2, %v1049_v15, 0.0 }
 0x1f3   : > { %v1065_v18 = vsel %vm1054_vm2, %v1048_v16, 0.0  ;;  %v1018_v1 = vmax.f32 %v1010_v12, 0.0  ;;  %v1057_v40 = vadd.f32 %v1056_v33, %v1055_v23 }
 0x1f4   : > { %v1066_v21 = vadd.f32 %v1065_v18, %v1064_v9  ;;  %v1017_v6 = vmax.f32 %v1009_v17, 0.0  ;;  %v1542_v22 = vpop.f32.mrb[8].mxu1 }
 0x1f5   : > { %v1012_v25 = vsub.f32 0.3, %v1542_v22  ;;  %v996_v26 = vpop.f32.mrb[9].mxu1  ;;  %v1051_v27 = vsel %vm1043_vm7, %v1018_v1, 0.0  ;;  %v1058_v45 = vrot.slane %v1057_v40, 2 }
 0x1f6   : > { %v1050_v28 = vsel %vm1042_vm8, %v1017_v6, 0.0  ;;  %v1068_v29 = vadd.f32 %v1067_v24, %v1066_v21  ;;  %v1011_v30 = vsub.f32 0.3, %v996_v26  ;;  %v1071_v35 = vsel %vm1054_vm2, %v1051_v27, 0.0 }
 0x1f7   : > { %v1069_v31 = vsel %vm1054_vm2, %v1050_v28, 0.0  ;;  %v1020_v32 = vmax.f32 %v1012_v25, 0.0  ;;  %v1059_v47 = vadd.f32 %v1058_v45, %v1057_v40 }
 0x1f8   : > { %v1070_v34 = vadd.f32 %v1069_v31, %v1068_v29  ;;  %v1019_v14 = vmax.f32 %v1011_v30, 0.0 }
 0x1f9   : > { %v1053_v36 = vsel %vm1045_vm9, %v1020_v32, 0.0  ;;  %v1060_v50 = vrot.slane %v1059_v47, 1 }
 0x1fa   : > { %v1052_v37 = vsel %vm1044_vm10, %v1019_v14, 0.0  ;;  %v1072_v38 = vadd.f32 %v1071_v35, %v1070_v34  ;;  %v1075_v42 = vsel %vm1054_vm2, %v1053_v36, 0.0 }
 0x1fb   : > { %v1073_v39 = vsel %vm1054_vm2, %v1052_v37, 0.0  ;;  %v1061_v53 = vadd.f32 %v1060_v50, %v1059_v47 }
 0x1fc   : > { %v1074_v41 = vadd.f32 %v1073_v39, %v1072_v38 }
 0x1fe   : > { %v1076_v43 = vadd.f32 %v1075_v42, %v1074_v41 }
 0x200   : > { %v1077_v44 = vrot.slane %v1076_v43, 4 }
 0x202   : > { %v1078_v46 = vadd.f32 %v1077_v44, %v1076_v43 }
 0x204   : > { %v1079_v48 = vrot.slane %v1078_v46, 2 }
 0x206   : > { %v1080_v49 = vadd.f32 %v1079_v48, %v1078_v46 }
 0x208   : > { %v1081_v51 = vrot.slane %v1080_v49, 1 }
 0x20a   : > { %v1082_v52 = vadd.f32 %v1081_v51, %v1080_v49 }
 0x20c   : > { %v1083_v54 = vmul.f32 0.125, %v1082_v52 }
 0x20e   : > { %v1084_v55 = vadd.f32 %v1083_v54, %v1061_v53 }
 0x210   : > { %1087 = vperm.xlu0 %1665, %v1084_v55  }
 0x28f   : > { %v1088_v56 = vpop.permute.xlu0 %1087 }
 0x290   : > { %1090 = vst [vmem:[%s454_s20] sm:$0xff] %v1088_v56 }
 0x291   : > { %1849 = shalt.err (!%p1846_p6)
}
 0x292   : > { %s1850_s1 = scalar_lea.hbm %s2426_s26, 128  ;;  %s1854_s3 = scalar_lea.hbm %s2473_s6, 384 }
 0x293   : > { %p1851_p9 = scmp.ne.s32.totalorder %s2426_s26, %s1850_s1  ;;  %p1855_p2 = scmp.lt.u32.totalorder %s2426_s26, %s2473_s6 }
 0x294   : > { %p1856_p4 = scmp.lt.u32.totalorder %s1854_s3, %s1850_s1  ;;  %p1858_p3 = scmp.lt.u32.totalorder %s1850_s1, %s2426_s26 }
 0x295   : > { %p1852_p10 = pnand %p1851_p9, %p2490_p7 }
 0x296   : > { %p1857_p5 = por %p1856_p4, %p1855_p2 }
 0x297   : > { %p1853_p0 = pneg %p1852_p10 }
 0x298   : > { %p1859_p11 = por %p1858_p3, %p1857_p5 }
 0x29a   : > { %p1860_p8 = pnand %p1859_p11, %p1853_p0 }
 0x29c   : > { %1863 = shalt.err (!%p1860_p8)
}
 0x29d   : > { %1618 = dma.vmem_to_hbm [thread:$0]  (%p2490_p7), %s2421_s7, 128, %s2426_s26, %s1092_s23  }
 0x29e PF: > { %p1624_p12 = scmp.ge.s32.totalorder %s1914_s24, 2  ;;  %s1117_s28 = sand.u32 1, %s1902_s21  }
 0x29f   : > { %p2491_p1 = scmp.ne.s32.totalorder %s2485_s10, 0  ;;  %s1118_s8 = scalar_lea.sflag [#allocation4], %s1117_s28 }
 0x2a1   : > { %p1621_p13 = pnand %p1624_p12, %p2491_p1 }
 0x2a3   : > { %1897 = dma.done.wait (!%p1621_p13), %s1118_s8, 128  }
 0x2a4   : > { %1899 = vsyncadd (!%p1621_p13), %s1118_s8, 4294967168  ;;  %s2492_s15 = sld [smem:[#allocation19_spill]]  ;;  %s2493_s23 = sld [smem:[#allocation20_spill]] }
 0x2a5   : > { %p28_p6 = scmp.ge.s32.totalorder %s1991_s27, 5   ;;  %s2494_s21 = smov %s1906_s22 }
 0x2a6   : > { %s2496_s24 = smov %s1991_s27 }
 0x2a7   :  { %30 = sbr.rel (!%p28_p6) target bundleno = 14 (0xe), region = 150 }
 0x2aa   : > { %s2495_s22 = smov %s2492_s15 }
 0x2ae   :  { %1123 = vsyncpa [#allocation3], 1 }
 0x2af   :  { %1125 = vsyncpa [#allocation3 + $0x1], 1 }
 0x2b0   :  { %1126 = vsyncpa [#allocation6], 1 }
 0x2b1   :  { %1128 = vsyncpa [#allocation6 + $0x1], 1 }
 0x2b2   :  { %1129 = vsyncpa [#allocation9], 1 }
 0x2b3   :  { %1131 = vsyncpa [#allocation9 + $0x1], 1 }
 0x2b4   :  { %1132 = vsyncpa [#allocation12], 1 }
 0x2b5   :  { %1134 = vsyncpa [#allocation12 + $0x1], 1 }
 0x2b6   :  { %1135 = vsyncpa [#allocation4], 1 }
 0x2b7   :  { %1137 = vsyncpa [#allocation4 + $0x1], 1 }

</bundles_post_ra>
